<compile_context>
chip_gen: v5e
topology: v5e:2x2
jax: 0.10.0
libtpu: 0.0.40
codegen_flags: <defaults>
</compile_context>

<pallas_src>
import jax
import jax.numpy as jnp
from jax import lax
from jax.experimental import pallas as pl
from jax.experimental.pallas import tpu as pltpu


def _pick_row_tile(batch):
    """Largest row tile that divides the batch, gated on chip generation."""
    kind = ""
    try:
        kind = jax.devices()[0].device_kind.lower()
    except Exception:
        pass
    # v5e: 4x128x128 MXU + 16 MiB scoped VMEM default -> a 128-row LHS is already
    # the native tile and halves the f32 [TM, B] live set.  v6e/v7x: keep 256.
    max_tm = 128 if "v5" in kind else 256
    for tm in (256, 128, 64, 32, 16, 8):
        if tm <= max_tm and batch % tm == 0:
            return tm
    return batch  # tiny / odd batches: single block equal to the full array dim


def _vmem_cap_bytes():
    try:
        return int(pltpu.get_tpu_info().vmem_capacity_bytes)
    except Exception:
        return 64 << 20  # conservative (v7x per-TC physical VMEM)


def _make_kernel(inv_temp, tm, batch):
    inv_temp = float(inv_temp)

    def kernel(f_ref, gT_ref, out_ref, mc_ref, lc_ref, acc_ref):
        i = pl.program_id(0)
        nblk = pl.num_programs(0)

        # ---- init running accumulators (column online-softmax + scalar sum) ----
        @pl.when(i == 0)
        def _init():
            mc_ref[...] = jnp.full_like(mc_ref, -jnp.inf)
            lc_ref[...] = jnp.zeros_like(lc_ref)
            acc_ref[...] = jnp.zeros_like(acc_ref)

        f = f_ref[...]                                   # [TM, Dp], bf16
        gT = gT_ref[...]                                 # [Dp, B],  bf16 (resident)

        # Plain NN MXU contraction over the feature dim; f32 accumulation.
        logits = jnp.dot(f, gT, preferred_element_type=jnp.float32) * inv_temp  # [TM, B]

        # Diagonal for this row block, extracted from the MXU logits slab
        # (serves BOTH cross-entropy directions).
        row0 = i * tm
        row_ids = lax.broadcasted_iota(jnp.int32, (tm, batch), 0)
        col_ids = lax.broadcasted_iota(jnp.int32, (tm, batch), 1)
        diag = jnp.sum(jnp.where(col_ids == row_ids + row0, logits, 0.0),
                       axis=1, keepdims=True)            # [TM, 1]

        # ---- fmri -> image: per-row logsumexp (complete within the block) ----
        m_r = jnp.max(logits, axis=1, keepdims=True)                      # [TM, 1]
        lse_r = m_r + jnp.log(jnp.sum(jnp.exp(logits - m_r),
                                      axis=1, keepdims=True))             # [TM, 1]

        # ---- image -> fmri: online-softmax accumulation over row blocks ----
        blk_cmax = jnp.max(logits, axis=0, keepdims=True)                 # [1, B]
        m_new = jnp.maximum(mc_ref[...], blk_cmax)                        # [1, B]
        lc_ref[...] = (lc_ref[...] * jnp.exp(mc_ref[...] - m_new)
                       + jnp.sum(jnp.exp(logits - m_new),
                                 axis=0, keepdims=True))
        mc_ref[...] = m_new

        # Scalar accumulator: sum_i (lse_r_i - 2 * diag_i)  (diag shared by both CEs).
        acc_ref[...] = acc_ref[...] + jnp.sum(lse_r - 2.0 * diag, keepdims=True)

        # ---- finalize on the last row block ----
        @pl.when(i == nblk - 1)
        def _finalize():
            lse_c_sum = jnp.sum(mc_ref[...] + jnp.log(lc_ref[...]),
                                keepdims=True)                            # (1, 1)
            out_ref[...] = (acc_ref[...] + lse_c_sum) * (0.5 / float(batch))

    return kernel


def contrastive_loss(fmri_features, image_features, temperature=0.07):
    """Pallas TPU implementation of ContrastiveLoss.forward. Returns a scalar."""
    B, D = fmri_features.shape
    assert image_features.shape == (B, D)

    # Cast wide floats to bf16: halves VMEM/HBM bytes, native bf16 MXU path.
    def _to_compute_dtype(x):
        if jnp.issubdtype(x.dtype, jnp.floating) and jnp.dtype(x.dtype).itemsize > 2:
            return x.astype(jnp.bfloat16)
        return x

    f = _to_compute_dtype(fmri_features)
    g = _to_compute_dtype(image_features)

    # Lane-dense feature dim: pad D to a multiple of 128 (zeros don't change dots).
    pad = (-D) % 128
    if pad:
        f = jnp.pad(f, ((0, 0), (0, pad)))
        g = jnp.pad(g, ((0, 0), (0, pad)))
    Dp = D + pad

    # One-time XLA transpose so the kernel never transposes the resident operand.
    gT = g.T                                             # [Dp, B]

    tm = _pick_row_tile(B)
    nblk = B // tm
    inv_temp = 1.0 / float(temperature)

    # Explicit VMEM budget from the real footprint (with headroom):
    #   image^T block (single-buffered) + 2x fmri [TM, Dp] buffers
    #   + ~4x [TM, B] f32 intermediates (logits + exp temporaries) + [1, B] scratch.
    itemsize = jnp.dtype(f.dtype).itemsize
    img_bytes = Dp * B * itemsize                        # Buffered(1)
    fmri_bytes = 2 * tm * Dp * itemsize                  # double-buffered
    inter_bytes = 4 * tm * B * 4                         # f32 live intermediates
    scratch_bytes = (2 * B + 64) * 4
    vmem_limit = int(1.5 * (img_bytes + fmri_bytes + inter_bytes + scratch_bytes)) + (4 << 20)
    vmem_limit = max(16 << 20, min(vmem_limit, _vmem_cap_bytes()))

    out = pl.pallas_call(
        _make_kernel(inv_temp, tm, B),
        out_shape=jax.ShapeDtypeStruct((1, 1), jnp.float32),
        grid_spec=pltpu.PrefetchScalarGridSpec(
            num_scalar_prefetch=0,
            grid=(nblk,),
            in_specs=[
                # fmri rows for this block (double-buffered by default).
                pl.BlockSpec((tm, Dp), lambda i: (i, 0)),
                # full image^T, resident across the whole grid: constant index_map,
                # so single-buffer it (double buffering would only waste VMEM).
                pl.BlockSpec((Dp, B), lambda i: (0, 0),
                             pipeline_mode=pl.Buffered(1)),
            ],
            out_specs=pl.BlockSpec((1, 1), lambda i: (0, 0)),
            scratch_shapes=[
                pltpu.VMEM((1, B), jnp.float32),   # running column max  m_c
                pltpu.VMEM((1, B), jnp.float32),   # running column sum  l_c
                pltpu.VMEM((1, 1), jnp.float32),   # scalar accumulator
            ],
        ),
        compiler_params=pltpu.CompilerParams(
            dimension_semantics=("arbitrary",),    # row axis carries accumulators
            vmem_limit_bytes=vmem_limit,
        ),
    )(f, gT)
    return out[0, 0]


def _reference_loss(fmri_features, image_features, temperature=0.07):
    """Plain-JAX reference mirroring F.cross_entropy in both directions."""
    logits = (fmri_features.astype(jnp.float32)
              @ image_features.astype(jnp.float32).T) / temperature

    def ce(lg):
        lse = jax.scipy.special.logsumexp(lg, axis=1)
        return jnp.mean(lse - jnp.diagonal(lg))

    return 0.5 * (ce(logits) + ce(logits.T))


if __name__ == "__main__":
    key = jax.random.PRNGKey(0)
    k1, k2 = jax.random.split(key)

    B, D = 8, 32  # small [batch, embed_dim] shapes consistent with the module
    # Use bf16-representable values so the check is insensitive to matmul precision.
    fmri = jax.random.normal(k1, (B, D), dtype=jnp.float32)
    img = jax.random.normal(k2, (B, D), dtype=jnp.float32)
    fmri = fmri.astype(jnp.bfloat16).astype(jnp.float32)
    img = img.astype(jnp.bfloat16).astype(jnp.float32)

    loss = contrastive_loss(fmri, img, temperature=0.07)
    jax.block_until_ready(loss)

    ref = _reference_loss(fmri, img, temperature=0.07)
    assert jnp.allclose(loss, ref, rtol=1e-4, atol=1e-4), (loss, ref)

    print("KERNEL_OK")
</pallas_src>

<mosaic_0001>
module attributes {stable_mosaic.version = 11 : i64} {
  func.func @kernel(%arg0: i32, %arg1: memref<8x128xbf16, #tpu.memory_space<vmem>>, %arg2: memref<128x8xbf16, #tpu.memory_space<vmem>>, %arg3: memref<1x1xf32, #tpu.memory_space<vmem>>, %arg4: memref<1x8xf32, #tpu.memory_space<vmem>>, %arg5: memref<1x8xf32, #tpu.memory_space<vmem>>, %arg6: memref<1x1xf32, #tpu.memory_space<vmem>>) attributes {dimension_semantics = [#tpu.dimension_semantics<arbitrary>], iteration_bounds = array<i64: 1>, scalar_prefetch = 0 : i64, scratch_operands = 3 : i64, tpu.core_type = #tpu.core_type<tc>, window_params = [{transform_indices = @transform_0, window_bounds = array<i64: 8, 128>}, {pipeline_mode = #tpu.pipeline_mode<synchronous>, transform_indices = @transform_1, window_bounds = array<i64: 128, 8>}, {pipeline_mode = #tpu.pipeline_mode<synchronous>, transform_indices = @transform_2, window_bounds = array<i64: 1, 1>}]} {
    %c0_i32 = arith.constant 0 : i32
    %0 = arith.cmpi eq, %arg0, %c0_i32 : i32
    %1 = arith.extui %0 : i1 to i32
    %c0_i32_0 = arith.constant 0 : i32
    %2 = arith.cmpi ne, %1, %c0_i32_0 : i32
    scf.if %2 {
      %cst_29 = arith.constant 0xFF800000 : f32
      %58 = vector.broadcast %cst_29 : f32 to vector<1x8xf32>
      %c0_30 = arith.constant 0 : index
      %c0_31 = arith.constant 0 : index
      %59 = vector.load %arg4[%c0_30, %c0_31] : memref<1x8xf32, #tpu.memory_space<vmem>>, vector<1x8xf32>
      tpu.vector_store %arg4[%c0_30, %c0_31], %58 {strides = array<i32>} : memref<1x8xf32, #tpu.memory_space<vmem>>, vector<1x8xf32>,
      %cst_32 = arith.constant 0.000000e+00 : f32
      %60 = vector.broadcast %cst_32 : f32 to vector<1x8xf32>
      %c0_33 = arith.constant 0 : index
      %c0_34 = arith.constant 0 : index
      %61 = vector.load %arg5[%c0_33, %c0_34] : memref<1x8xf32, #tpu.memory_space<vmem>>, vector<1x8xf32>
      tpu.vector_store %arg5[%c0_33, %c0_34], %60 {strides = array<i32>} : memref<1x8xf32, #tpu.memory_space<vmem>>, vector<1x8xf32>,
      %cst_35 = arith.constant 0.000000e+00 : f32
      %62 = vector.broadcast %cst_35 : f32 to vector<1x1xf32>
      %c0_36 = arith.constant 0 : index
      %c0_37 = arith.constant 0 : index
      %63 = vector.load %arg6[%c0_36, %c0_37] : memref<1x1xf32, #tpu.memory_space<vmem>>, vector<1x1xf32>
      tpu.vector_store %arg6[%c0_36, %c0_37], %62 {strides = array<i32>} : memref<1x1xf32, #tpu.memory_space<vmem>>, vector<1x1xf32>,
    } else {
    }
    %c0 = arith.constant 0 : index
    %c0_1 = arith.constant 0 : index
    %3 = vector.load %arg1[%c0, %c0_1] : memref<8x128xbf16, #tpu.memory_space<vmem>>, vector<8x128xbf16>
    %c0_2 = arith.constant 0 : index
    %c0_3 = arith.constant 0 : index
    %4 = vector.load %arg2[%c0_2, %c0_3] : memref<128x8xbf16, #tpu.memory_space<vmem>>, vector<128x8xbf16>
    %cst = arith.constant dense<0.000000e+00> : vector<8x8xf32>
    %5 = tpu.matmul %3, %4, %cst {dimension_numbers = #tpu.dot_dimension_numbers<[1], [0], [0], [1], [0, 0, 1, 1], [], []>} : vector<8x128xbf16>, vector<128x8xbf16>, vector<8x8xf32> -> vector<8x8xf32>
    %cst_4 = arith.constant 14.2857141 : f32
    %6 = vector.broadcast %cst_4 : f32 to vector<8x8xf32>
    %7 = arith.mulf %5, %6 : vector<8x8xf32>
    %c8_i32 = arith.constant 8 : i32
    %8 = arith.muli %arg0, %c8_i32 : i32
    %9 = tpu.iota {dimensions = array<i32: 0>} : vector<8x8xi32>
    %10 = tpu.iota {dimensions = array<i32: 1>} : vector<8x8xi32>
    %11 = vector.broadcast %8 : i32 to vector<8x8xi32>
    %12 = arith.addi %9, %11 : vector<8x8xi32>
    %13 = arith.cmpi eq, %10, %12 : vector<8x8xi32>
    %cst_5 = arith.constant 0.000000e+00 : f32
    %14 = vector.broadcast %cst_5 : f32 to vector<8x8xf32>
    %15 = arith.select %13, %7, %14 : vector<8x8xi1>, vector<8x8xf32>
    %cst_6 = arith.constant dense<0.000000e+00> : vector<8xf32>
    %16 = vector.multi_reduction <add>, %15, %cst_6 [1] : vector<8x8xf32> to vector<8xf32>
    %17 = vector.shape_cast %16 : vector<8xf32> to vector<8x1xf32>
    %cst_7 = arith.constant dense<0xFF800000> : vector<8xf32>
    %18 = vector.multi_reduction <maximumf>, %7, %cst_7 [1] : vector<8x8xf32> to vector<8xf32>
    %19 = vector.shape_cast %18 : vector<8xf32> to vector<8x1xf32>
    %20 = vector.broadcast %19 : vector<8x1xf32> to vector<8x8xf32>
    %21 = arith.subf %7, %20 : vector<8x8xf32>
    %22 = math.exp %21 : vector<8x8xf32>
    %cst_8 = arith.constant dense<0.000000e+00> : vector<8xf32>
    %23 = vector.multi_reduction <add>, %22, %cst_8 [1] : vector<8x8xf32> to vector<8xf32>
    %24 = vector.shape_cast %23 : vector<8xf32> to vector<8x1xf32>
    %25 = math.log %24 : vector<8x1xf32>
    %26 = arith.addf %19, %25 : vector<8x1xf32>
    %cst_9 = arith.constant dense<0xFF800000> : vector<8xf32>
    %27 = vector.multi_reduction <maximumf>, %7, %cst_9 [0] : vector<8x8xf32> to vector<8xf32>
    %28 = vector.shape_cast %27 : vector<8xf32> to vector<1x8xf32>
    %c0_10 = arith.constant 0 : index
    %c0_11 = arith.constant 0 : index
    %29 = vector.load %arg4[%c0_10, %c0_11] : memref<1x8xf32, #tpu.memory_space<vmem>>, vector<1x8xf32>
    %30 = arith.maximumf %29, %28 : vector<1x8xf32>
    %c0_12 = arith.constant 0 : index
    %c0_13 = arith.constant 0 : index
    %31 = vector.load %arg5[%c0_12, %c0_13] : memref<1x8xf32, #tpu.memory_space<vmem>>, vector<1x8xf32>
    %c0_14 = arith.constant 0 : index
    %c0_15 = arith.constant 0 : index
    %32 = vector.load %arg4[%c0_14, %c0_15] : memref<1x8xf32, #tpu.memory_space<vmem>>, vector<1x8xf32>
    %33 = arith.subf %32, %30 : vector<1x8xf32>
    %34 = math.exp %33 : vector<1x8xf32>
    %35 = arith.mulf %31, %34 : vector<1x8xf32>
    %36 = vector.broadcast %30 : vector<1x8xf32> to vector<8x8xf32>
    %37 = arith.subf %7, %36 : vector<8x8xf32>
    %38 = math.exp %37 : vector<8x8xf32>
    %cst_16 = arith.constant dense<0.000000e+00> : vector<8xf32>
    %39 = vector.multi_reduction <add>, %38, %cst_16 [0] : vector<8x8xf32> to vector<8xf32>
    %40 = vector.shape_cast %39 : vector<8xf32> to vector<1x8xf32>
    %41 = arith.addf %35, %40 : vector<1x8xf32>
    %c0_17 = arith.constant 0 : index
    %c0_18 = arith.constant 0 : index
    %42 = vector.load %arg5[%c0_17, %c0_18] : memref<1x8xf32, #tpu.memory_space<vmem>>, vector<1x8xf32>
    tpu.vector_store %arg5[%c0_17, %c0_18], %41 {strides = array<i32>} : memref<1x8xf32, #tpu.memory_space<vmem>>, vector<1x8xf32>,
    %c0_19 = arith.constant 0 : index
    %c0_20 = arith.constant 0 : index
    %43 = vector.load %arg4[%c0_19, %c0_20] : memref<1x8xf32, #tpu.memory_space<vmem>>, vector<1x8xf32>
    tpu.vector_store %arg4[%c0_19, %c0_20], %30 {strides = array<i32>} : memref<1x8xf32, #tpu.memory_space<vmem>>, vector<1x8xf32>,
    %c0_21 = arith.constant 0 : index
    %c0_22 = arith.constant 0 : index
    %44 = vector.load %arg6[%c0_21, %c0_22] : memref<1x1xf32, #tpu.memory_space<vmem>>, vector<1x1xf32>
    %cst_23 = arith.constant 2.000000e+00 : f32
    %45 = vector.broadcast %cst_23 : f32 to vector<8x1xf32>
    %46 = arith.mulf %45, %17 : vector<8x1xf32>
    %47 = arith.subf %26, %46 : vector<8x1xf32>
    %48 = vector.shape_cast %47 : vector<8x1xf32> to vector<1x8x1xf32>
    %cst_24 = arith.constant dense<0.000000e+00> : vector<1xf32>
    %49 = vector.multi_reduction <add>, %48, %cst_24 [1, 2] : vector<1x8x1xf32> to vector<1xf32>
    %50 = vector.shape_cast %49 : vector<1xf32> to vector<1x1x1xf32>
    %51 = vector.extract %50[0, 0, 0] : f32 from vector<1x1x1xf32>
    %52 = vector.broadcast %51 : f32 to vector<1x1xf32>
    %53 = arith.addf %44, %52 : vector<1x1xf32>
    %c0_25 = arith.constant 0 : index
    %c0_26 = arith.constant 0 : index
    %54 = vector.load %arg6[%c0_25, %c0_26] : memref<1x1xf32, #tpu.memory_space<vmem>>, vector<1x1xf32>
    tpu.vector_store %arg6[%c0_25, %c0_26], %53 {strides = array<i32>} : memref<1x1xf32, #tpu.memory_space<vmem>>, vector<1x1xf32>,
    %c0_i32_27 = arith.constant 0 : i32
    %55 = arith.cmpi eq, %arg0, %c0_i32_27 : i32
    %56 = arith.extui %55 : i1 to i32
    %c0_i32_28 = arith.constant 0 : i32
    %57 = arith.cmpi ne, %56, %c0_i32_28 : i32
    scf.if %57 {
      %c0_29 = arith.constant 0 : index
      %c0_30 = arith.constant 0 : index
      %58 = vector.load %arg4[%c0_29, %c0_30] : memref<1x8xf32, #tpu.memory_space<vmem>>, vector<1x8xf32>
      %c0_31 = arith.constant 0 : index
      %c0_32 = arith.constant 0 : index
      %59 = vector.load %arg5[%c0_31, %c0_32] : memref<1x8xf32, #tpu.memory_space<vmem>>, vector<1x8xf32>
      %60 = math.log %59 : vector<1x8xf32>
      %61 = arith.addf %58, %60 : vector<1x8xf32>
      %62 = vector.shape_cast %61 : vector<1x8xf32> to vector<1x1x8xf32>
      %cst_33 = arith.constant dense<0.000000e+00> : vector<1xf32>
      %63 = vector.multi_reduction <add>, %62, %cst_33 [1, 2] : vector<1x1x8xf32> to vector<1xf32>
      %64 = vector.shape_cast %63 : vector<1xf32> to vector<1x1x1xf32>
      %65 = vector.extract %64[0, 0, 0] : f32 from vector<1x1x1xf32>
      %66 = vector.broadcast %65 : f32 to vector<1x1xf32>
      %c0_34 = arith.constant 0 : index
      %c0_35 = arith.constant 0 : index
      %67 = vector.load %arg6[%c0_34, %c0_35] : memref<1x1xf32, #tpu.memory_space<vmem>>, vector<1x1xf32>
      %68 = arith.addf %67, %66 : vector<1x1xf32>
      %cst_36 = arith.constant 6.250000e-02 : f32
      %69 = vector.broadcast %cst_36 : f32 to vector<1x1xf32>
      %70 = arith.mulf %68, %69 : vector<1x1xf32>
      %c0_37 = arith.constant 0 : index
      %c0_38 = arith.constant 0 : index
      %71 = vector.load %arg3[%c0_37, %c0_38] : memref<1x1xf32, #tpu.memory_space<vmem>>, vector<1x1xf32>
      tpu.vector_store %arg3[%c0_37, %c0_38], %70 {strides = array<i32>} : memref<1x1xf32, #tpu.memory_space<vmem>>, vector<1x1xf32>,
    } else {
    }
    return
  }
  func.func @transform_0(%arg0: i32) -> (i32, i32) {
    %c0_i32 = arith.constant 0 : i32
    %c0_i32_0 = arith.constant 0 : i32
    return %arg0, %c0_i32 : i32, i32
  }
  func.func @transform_1(%arg0: i32) -> (i32, i32) {
    %c0_i32 = arith.constant 0 : i32
    %c0_i32_0 = arith.constant 0 : i32
    %c0_i32_1 = arith.constant 0 : i32
    return %c0_i32, %c0_i32_0 : i32, i32
  }
  func.func @transform_2(%arg0: i32) -> (i32, i32) {
    %c0_i32 = arith.constant 0 : i32
    %c0_i32_0 = arith.constant 0 : i32
    %c0_i32_1 = arith.constant 0 : i32
    return %c0_i32, %c0_i32_0 : i32, i32
  }
}

</mosaic_0001>

<bundles_post_ra>
// kernel: tpu_custom_call.1
= control target key start
LH: loop header
LB: loop body
LE: loop exit
PB: predicated region body
PF: predicated region fallthrough
CT: control target
= control target key end

     0   :  { %s357_s0 = inlined_call_operand.vmem [shape: bf16[8,128], index: 0, kind: input, shape index: {}]   ;;  %s358_s1 = inlined_call_operand.vmem [shape: bf16[128,8], index: 1, kind: input, shape index: {}]   ;;  %s359_s2 = inlined_call_operand.hbm [shape: f32[1,1], index: 2, kind: output, shape index: {}]  }
   0x1   :  { %v251_v0 = vld [vmem:[%s358_s1 + $0x38] sm:$0xff]  ;;  %v250_v1 = vld [vmem:[%s358_s1 + $0x30] sm:$0xff] }
   0x2   :  { %86 = vmatpush.bf16.msra.mxu0 %v251_v0 }
   0x3   :  { %7 = vsyncpa [#allocation6], 0  ;;  %v249_v2 = vld [vmem:[%s358_s1 + $0x28] sm:$0xff]  ;;  %v248_v3 = vld [vmem:[%s358_s1 + $0x20] sm:$0xff]  ;;  %vm16_vm0 = vcmask 57344   ;;  %v295_v9 = vmov -inf   ;;  %v101_v11 = vlaneseq }
   0x4   :  { %v247_v4 = vld [vmem:[%s358_s1 + $0x18] sm:$0xff]  ;;  %v246_v5 = vld [vmem:[%s358_s1 + $0x10] sm:$0xff]  ;;  %v245_v6 = vld [vmem:[%s358_s1 + $0x8] sm:$0xff]  ;;  %17 = vst.msk [vmem:[#allocation2] sm:$0x1] %vm16_vm0, %v295_v9  ;;  %v296_v10 = vmov 0.0  }
   0x5   :  { %v244_v7 = vld [vmem:[%s358_s1] sm:$0xff]  ;;  %18 = vst.msk [vmem:[#allocation3] sm:$0x1] %vm16_vm0, %v296_v10  ;;  %v102_v12 = vshrl.u32 %v101_v11, 7  ;;  %v104_v13 = vand.u32 127, %v101_v11  ;;  %vm109_vm1 = vcmask 64512  }
   0x6   :  { %87 = vmatpush.bf16.msra.mxu0 %v250_v1  ;;  %v21_v8 = vld [vmem:[%s357_s0] sm:$0xf]  ;;  %vm158_vm3 = vcmask 7168   ;;  %vm19_vm4 = vcmask 0   ;;  %s297_s27 = smov [#allocation5]   ;;  %s203_s3 = sshll.u32 %s359_s2, 4  ;;  %s204_s3 = int_to_ptr.hbm [resolvable:$true] %s203_s3 }
   0x7   :  { %vm107_vm2 = vcmp.eq.s32.totalorder %v104_v13, %v102_v12  ;;  %20 = vst.msk [vmem:[#allocation4] sm:$0x1] %vm19_vm4, %v296_v10  ;;  %s201_s28 = sshll.u32 %s297_s27, 4  ;;  %s202_s28 = int_to_ptr.vmem [resolvable:$true] %s201_s28 }
   0xa   :  { %88 = vmatpush.bf16.msra.mxu0 %v249_v2 }
   0xb   :  { %v131_v25 = vld [vmem:[#allocation2] sm:$0x1] }
   0xc   :  { %v133_v40 = vld [vmem:[#allocation3] sm:$0x1] }
   0xe   :  { %89 = vmatpush.bf16.msra.mxu0 %v248_v3 }
  0x12   :  { %90 = vmatpush.bf16.msra.mxu0 %v247_v4 }
  0x16   :  { %91 = vmatpush.bf16.msra.mxu0 %v246_v5 }
  0x1a   :  { %92 = vmatpush.bf16.msra.mxu0 %v245_v6 }
  0x1e   :  { %93 = vmatpush.bf16.msra.mxu0 %v244_v7 }
  0x21   :  { %94 = vmatmul.bf16.vlgmr.msra.gmra.mxu0 %v21_v8 }
  0x9e   :  { %v95_v14 = vpop.f32.mrf.mxu0 }
  0x9f   :  { %v99_v15 = vmul.f32 14.285714, %v95_v14 }
  0xa1   :  { %v113_v16 = vsel %vm109_vm1, %v99_v15, -inf  ;;  %v108_v17 = vsel %vm107_vm2, %v99_v15, 0.0 }
  0xa2   :  { %114 = vmax.xlane.f32.xlu0 %v113_v16  ;;  %v125_v18 = vrot.slane %v113_v16, 4  ;;  %v110_v19 = vsel %vm109_vm1, %v108_v17, 0.0 }
  0xa3   :  { %111 = vadd.xlane.f32.xlu1 %v110_v19 }
  0xa4   :  { %v126_v20 = vmax.f32 %v113_v16, %v125_v18 }
  0xa6   :  { %v127_v21 = vrot.slane %v126_v20, 2  ;;  %v97_v22 = vpop.f32.mrf.mxu0 }
  0xa8   :  { %v128_v23 = vmax.f32 %v126_v20, %v127_v21 }
  0xaa   :  { %v129_v24 = vrot.slane %v128_v23, 1 }
  0xac   :  { %v130_v26 = vmax.f32 %v128_v23, %v129_v24 }
  0xae   :  { %v132_v27 = vmax.f32 %v131_v25, %v130_v26 }
  0xb0   :  { %v139_v28 = vperm.slane %v132_v27, 0  ;;  %154 = vst.msk [vmem:[#allocation2] sm:$0x1] %vm16_vm0, %v132_v27  ;;  %v134_v31 = vsub.f32 %v131_v25, %v132_v27 }
  0xb2   :  { %v141_v29 = vsub.f32 %v99_v15, %v139_v28  ;;  %v135_v32 = vmul.f32 1.442695, %v134_v31 }
  0xb4   :  { %v142_v30 = vmul.f32 1.442695, %v141_v29 }
  0xb6   :  { %259 = vpow2.f32 %v142_v30 }
  0xb7   :  { %261 = vpow2.f32 %v135_v32  ;;  %v176_v48 = vld [vmem:[#allocation2] sm:$0x1] }
  0xbc   :  { %v260_v33 = vpop.eup %259 }
  0xbd   :  { %v144_v34 = vsel %vm109_vm1, %v260_v33, 0.0  ;;  %v262_v39 = vpop.eup %261 }
  0xbe   :  { %v145_v35 = vrot.slane %v144_v34, 4  ;;  %v137_v42 = vmul.f32 %v262_v39, %v133_v40 }
  0xc0   :  { %v146_v36 = vadd.f32 %v145_v35, %v144_v34 }
  0xc2   :  { %v147_v37 = vrot.slane %v146_v36, 2 }
  0xc4   :  { %v148_v38 = vadd.f32 %v147_v37, %v146_v36 }
  0xc6   :  { %v149_v41 = vrot.slane %v148_v38, 1 }
  0xc8   :  { %v150_v43 = vadd.f32 %v149_v41, %v148_v38 }
  0xca   :  { %v151_v44 = vadd.f32 %v150_v43, %v137_v42 }
  0xcc   :  { %153 = vst.msk [vmem:[#allocation3] sm:$0x1] %vm16_vm0, %v151_v44 }
  0xd3   :  { %v177_v45 = vld [vmem:[#allocation3] sm:$0x1] }
  0xd4   :  { %263 = vlog2.f32 %v177_v45 }
  0xda   :  { %v264_v46 = vpop.eup %263 }
  0xdb   :  { %v179_v47 = vmul.f32 0.6931472, %v264_v46 }
  0xdd   :  { %v180_v49 = vadd.f32 %v179_v47, %v176_v48 }
  0xdf   :  { %v181_v50 = vsel %vm16_vm0, %v180_v49, 0.0 }
  0xe0   :  { %182 = vadd.xlane.f32.xlu2 %v181_v50 }
 0x115   :  { %v115_v51 = vpop.xlane.xlu0 %114 }
 0x116   :  { %v116_v52 = vsub.f32 %v99_v15, %v115_v51  ;;  %v112_v58 = vpop.xlane.xlu1 %111  ;;  %v155_v15 = vld [vmem:[#allocation4] sm:$0x1] }
 0x117   :  { %v156_v60 = vmul.f32 2.0, %v112_v58 }
 0x118   :  { %v117_v53 = vmul.f32 1.442695, %v116_v52 }
 0x11a   :  { %265 = vpow2.f32 %v117_v53 }
 0x120   :  { %v266_v54 = vpop.eup %265 }
 0x121   :  { %v119_v55 = vsel %vm109_vm1, %v266_v54, 0.0 }
 0x122   :  { %120 = vadd.xlane.f32.xlu0 %v119_v55 }
 0x153   :  { %v183_v0 = vpop.xlane.xlu2 %182 }
 0x154   :  { %v184_v1 = vrot.slane %v183_v0, 4 }
 0x156   :  { %v185_v2 = vadd.f32 %v184_v1, %v183_v0 }
 0x158   :  { %v186_v3 = vrot.slane %v185_v2, 2 }
 0x15a   :  { %v187_v7 = vadd.f32 %v186_v3, %v185_v2 }
 0x15c   :  { %v188_v11 = vrot.slane %v187_v7, 1 }
 0x15e   :  { %v189_v14 = vadd.f32 %v188_v11, %v187_v7 }
 0x195   :  { %v121_v56 = vpop.xlane.xlu0 %120 }
 0x196   :  { %267 = vlog2.f32 %v121_v56 }
 0x19c   :  { %v268_v57 = vpop.eup %267 }
 0x19d   :  { %v123_v59 = vmul.f32 0.6931472, %v268_v57 }
 0x19f   :  { %v124_v61 = vadd.f32 %v123_v59, %v115_v51 }
 0x1a1   :  { %v157_v62 = vsub.f32 %v124_v61, %v156_v60 }
 0x1a3   :  { %v159_v63 = vsel %vm158_vm3, %v157_v62, 0.0 }
 0x1a4   :  { %160 = vadd.xlane.f32.xlu1 %v159_v63 }
 0x217   :  { %v161_v4 = vpop.xlane.xlu1 %160 }
 0x218   :  { %v162_v5 = vrot.slane %v161_v4, 4 }
 0x21a   :  { %v163_v6 = vadd.f32 %v162_v5, %v161_v4 }
 0x21c   :  { %v164_v8 = vrot.slane %v163_v6, 2 }
 0x21e   :  { %v165_v9 = vadd.f32 %v164_v8, %v163_v6 }
 0x220   :  { %v166_v12 = vrot.slane %v165_v9, 1 }
 0x222   :  { %v167_v13 = vadd.f32 %v166_v12, %v165_v9 }
 0x224   :  { %252 = vpush %v167_v13 }
 0x225   :  { %254 = vpush %v189_v14 }
 0x255   :  { %s253_s0 = spop %252 }
 0x256   :  { %v169_v16 = vstv %s253_s0  ;;  %s255_s1 = spop %254 }
 0x257   :  { %v170_v10 = vadd.f32 %v169_v16, %v155_v15  ;;  %v191_v17 = vstv %s255_s1 }
 0x259   :  { %172 = vst.msk [vmem:[#allocation4] sm:$0x1] %vm19_vm4, %v170_v10 }
 0x260   :  { %v192_v18 = vld [vmem:[#allocation4] sm:$0x1] }
 0x261   :  { %v193_v19 = vadd.f32 %v192_v18, %v191_v17 }
 0x263   :  { %v194_v20 = vmul.f32 0.0625, %v193_v19 }
 0x265   :  { %195 = vst.msk [vmem:[#allocation5] sm:$0x1] %vm19_vm4, %v194_v20 }
 0x266   :  { %206 = dma.vmem_to_hbm [thread:$0]  %s202_s28, 16, %s204_s3, [#allocation6]  }
 0x267   :  { %293 = dma.done.wait [#allocation6], 16  }
 0x268   :  { %294 = vsyncadd [#allocation6], 4294967280 }
 0x269   :  { %211 = vsyncpa [#allocation6], 1 }

</bundles_post_ra>
